<compile_context>
chip_gen: v7x
topology: tpu7x:2x2x1
jax: 0.10.0
libtpu: 0.0.40
codegen_flags: <defaults>
</compile_context>

<pallas_src>
import jax
import jax.numpy as jnp
from jax.experimental import pallas as pl
from jax.experimental.pallas import tpu as pltpu


def _mlp_kernel(x_ref, w1_ref, b1_ref, w2_ref, b2_ref, w3r_ref, b3_ref, o_ref):
    # x_ref:   (TM, state_dim)  tile of input rows (matmul compute dtype)
    # w1_ref:  (state_dim, H)   (matmul compute dtype)
    # b1_ref:  (1, H)           f32
    # w2_ref:  (H, H)           (matmul compute dtype)
    # b2_ref:  (1, H)           f32
    # w3r_ref: (1, H)           f32  (fc3 weight as a lane row)
    # b3_ref:  (1, 1)           f32
    # o_ref:   (TM, 1)          f32
    x = x_ref[...]
    w1 = w1_ref[...]
    w2 = w2_ref[...]

    # fc1 + ReLU  (MXU, f32 accumulation; bias add / ReLU on VPU in f32)
    h1 = jnp.dot(x, w1, preferred_element_type=jnp.float32) + b1_ref[...]
    h1 = jnp.maximum(h1, 0.0)

    # fc2 + ReLU  (MXU, f32 accumulation)
    h2 = jnp.dot(h1.astype(w2.dtype), w2,
                 preferred_element_type=jnp.float32) + b2_ref[...]
    h2 = jnp.maximum(h2, 0.0)

    # fc3 (H -> 1): VPU multiply + XLU lane reduction (MXU slot stays free).
    a1 = jnp.sum(h2 * w3r_ref[...], axis=-1, keepdims=True) + b3_ref[...]
    o_ref[...] = a1.astype(o_ref.dtype)


def value_network_forward(X, params, *, row_tile=512, compute_dtype=jnp.float32):
    """X: (bs, t, n_agents, state_dim) float32 -> (bs, t, n_agents, 1) float32.

    row_tile:      rows per grid step (rounded to a multiple of 8; 256-512
                   recommended for real batch sizes, automatically clamped for
                   tiny N so the whole problem runs as a single block).
    compute_dtype: dtype of the MXU matmul operands (jnp.float32 or
                   jnp.bfloat16).  Bias add / ReLU / accumulation stay f32.
    """
    w1, b1, w2, b2, w3, b3 = params
    bs, t, na, state_dim = X.shape
    hidden_dim = w1.shape[1]
    N = bs * t * na
    X2d = X.reshape(N, state_dim)

    # fc3 weight as a (1, H) lane row for the in-kernel lane reduction.
    w3_row = jnp.transpose(w3).reshape(1, hidden_dim).astype(jnp.float32)

    # Matmul operands in compute dtype; everything else f32.
    xc = X2d.astype(compute_dtype)
    w1c = w1.astype(compute_dtype)
    w2c = w2.astype(compute_dtype)
    b1f = b1.reshape(1, hidden_dim).astype(jnp.float32)
    b2f = b2.reshape(1, hidden_dim).astype(jnp.float32)
    b3f = b3.reshape(1, 1).astype(jnp.float32)

    # Row tile: multiple of 8, clamped so tiny problems use a single grid step.
    tm = min(int(row_tile), max(8, ((N + 7) // 8) * 8))
    tm = ((tm + 7) // 8) * 8
    grid = (pl.cdiv(N, tm),)   # no pad copy; tail block is masked on store

    itemsize = jnp.dtype(compute_dtype).itemsize
    flops = 2 * N * (state_dim * hidden_dim + hidden_dim * hidden_dim + hidden_dim)
    bytes_accessed = (
        N * state_dim * itemsize                              # X read
        + (state_dim + hidden_dim) * hidden_dim * itemsize    # W1, W2
        + (2 * hidden_dim + hidden_dim + 1) * 4               # b1, b2, w3_row, b3
        + N * 4                                               # output write
    )

    out2d = pl.pallas_call(
        _mlp_kernel,
        out_shape=jax.ShapeDtypeStruct((N, 1), jnp.float32),
        grid_spec=pltpu.PrefetchScalarGridSpec(
            num_scalar_prefetch=0,
            grid=grid,
            in_specs=[
                pl.BlockSpec((tm, state_dim), lambda i: (i, 0)),           # X tile
                pl.BlockSpec((state_dim, hidden_dim), lambda i: (0, 0)),   # W1 (resident)
                pl.BlockSpec((1, hidden_dim), lambda i: (0, 0)),           # b1
                pl.BlockSpec((hidden_dim, hidden_dim), lambda i: (0, 0)),  # W2 (resident)
                pl.BlockSpec((1, hidden_dim), lambda i: (0, 0)),           # b2
                pl.BlockSpec((1, hidden_dim), lambda i: (0, 0)),           # w3 row
                pl.BlockSpec((1, 1), lambda i: (0, 0)),                    # b3
            ],
            out_specs=pl.BlockSpec((tm, 1), lambda i: (i, 0)),
        ),
        compiler_params=pltpu.CompilerParams(
            dimension_semantics=("parallel",)),
        cost_estimate=pl.CostEstimate(
            flops=flops, transcendentals=0, bytes_accessed=bytes_accessed),
    )(xc, w1c, b1f, w2c, b2f, w3_row, b3f)

    return out2d.reshape(bs, t, na, 1)


def init_params(key, state_dim, hidden_dim):
    """Deterministic synthetic init (PyTorch-Linear-like uniform fan_in bounds)."""
    ks = jax.random.split(key, 6)

    def lin(kw, kb, fan_in, fan_out):
        bound = 1.0 / jnp.sqrt(fan_in)
        w = jax.random.uniform(kw, (fan_in, fan_out), jnp.float32, -bound, bound)
        b = jax.random.uniform(kb, (1, fan_out), jnp.float32, -bound, bound)
        return w, b

    w1, b1 = lin(ks[0], ks[1], state_dim, hidden_dim)
    w2, b2 = lin(ks[2], ks[3], hidden_dim, hidden_dim)
    w3, b3 = lin(ks[4], ks[5], hidden_dim, 1)
    return (w1, b1, w2, b2, w3, b3)


def reference_forward(X, params):
    """Pure-JAX reference (mirrors the PyTorch forward exactly)."""
    w1, b1, w2, b2, w3, b3 = params
    bs, t, na, sd = X.shape
    x = X.reshape(-1, sd)
    h1 = jax.nn.relu(x @ w1 + b1)
    h2 = jax.nn.relu(h1 @ w2 + b2)
    a1 = h2 @ w3 + b3
    return a1.reshape(bs, t, na, 1)


if __name__ == "__main__":
    # Scheme-implied dims (small synthetic config):
    #   state vshape = 16, obs vshape = 13, n_agents = 3
    #   state_dim = 16 + 13 + 3 = 32
    n_agents = 3
    state_dim = 16 + 13 + n_agents   # 32
    hidden_dim = 32                  # small hidden for the main test
    bs, t = 2, 8                     # N = 48 -> single grid step

    key = jax.random.PRNGKey(0)
    k_x, k_p, k_x2, k_p2 = jax.random.split(key, 4)
    X = jax.random.normal(k_x, (bs, t, n_agents, state_dim), dtype=jnp.float32)
    params = init_params(k_p, state_dim, hidden_dim)

    # 1) f32 path (exact vs. reference).
    out = jax.block_until_ready(value_network_forward(X, params))
    ref = reference_forward(X, params)
    assert out.shape == (bs, t, n_agents, 1), out.shape
    assert jnp.allclose(out, ref, atol=1e-5, rtol=1e-5), float(
        jnp.max(jnp.abs(out - ref)))

    # 2) Partial tail block (no pad path): N = 120 rows, row_tile = 64 -> grid 2,
    #    second block overhangs the array and is masked on store.
    X2 = jax.random.normal(k_x2, (2, 20, n_agents, state_dim), dtype=jnp.float32)
    out2 = jax.block_until_ready(value_network_forward(X2, params, row_tile=64))
    ref2 = reference_forward(X2, params)
    assert jnp.allclose(out2, ref2, atol=1e-5, rtol=1e-5), float(
        jnp.max(jnp.abs(out2 - ref2)))

    # 3) Module-default hidden_dim=256 (production config), small batch.
    params256 = init_params(k_p2, state_dim, 256)
    out3 = jax.block_until_ready(value_network_forward(X, params256))
    ref3 = reference_forward(X, params256)
    assert jnp.allclose(out3, ref3, atol=1e-4, rtol=1e-4), float(
        jnp.max(jnp.abs(out3 - ref3)))

    # 4) bf16 matmul operands (v6e/v7x fast path); looser tolerance.
    out_bf16 = jax.block_until_ready(
        value_network_forward(X, params, compute_dtype=jnp.bfloat16))
    assert jnp.allclose(out_bf16, ref, atol=1e-1, rtol=1e-1), float(
        jnp.max(jnp.abs(out_bf16 - ref)))

    print("KERNEL_OK")
</pallas_src>

<mosaic_0001>
module attributes {stable_mosaic.version = 11 : i64} {
  func.func @_mlp_kernel(%arg0: i32, %arg1: memref<48x32xf32, #tpu.memory_space<vmem>>, %arg2: memref<32x32xf32, #tpu.memory_space<vmem>>, %arg3: memref<1x32xf32, #tpu.memory_space<vmem>>, %arg4: memref<32x32xf32, #tpu.memory_space<vmem>>, %arg5: memref<1x32xf32, #tpu.memory_space<vmem>>, %arg6: memref<1x32xf32, #tpu.memory_space<vmem>>, %arg7: memref<1x1xf32, #tpu.memory_space<vmem>>, %arg8: memref<48x1xf32, #tpu.memory_space<vmem>>) attributes {dimension_semantics = [#tpu.dimension_semantics<parallel>], iteration_bounds = array<i64: 1>, scalar_prefetch = 0 : i64, scratch_operands = 0 : i64, tpu.core_type = #tpu.core_type<tc>, window_params = [{transform_indices = @transform_0, window_bounds = array<i64: 48, 32>}, {pipeline_mode = #tpu.pipeline_mode<synchronous>, transform_indices = @transform_1, window_bounds = array<i64: 32, 32>}, {pipeline_mode = #tpu.pipeline_mode<synchronous>, transform_indices = @transform_2, window_bounds = array<i64: 1, 32>}, {pipeline_mode = #tpu.pipeline_mode<synchronous>, transform_indices = @transform_3, window_bounds = array<i64: 32, 32>}, {pipeline_mode = #tpu.pipeline_mode<synchronous>, transform_indices = @transform_4, window_bounds = array<i64: 1, 32>}, {pipeline_mode = #tpu.pipeline_mode<synchronous>, transform_indices = @transform_5, window_bounds = array<i64: 1, 32>}, {pipeline_mode = #tpu.pipeline_mode<synchronous>, transform_indices = @transform_6, window_bounds = array<i64: 1, 1>}, {transform_indices = @transform_7, window_bounds = array<i64: 48, 1>}]} {
    %c0 = arith.constant 0 : index
    %c0_0 = arith.constant 0 : index
    %0 = vector.load %arg1[%c0, %c0_0] : memref<48x32xf32, #tpu.memory_space<vmem>>, vector<48x32xf32>
    %c0_1 = arith.constant 0 : index
    %c0_2 = arith.constant 0 : index
    %1 = vector.load %arg2[%c0_1, %c0_2] : memref<32x32xf32, #tpu.memory_space<vmem>>, vector<32x32xf32>
    %c0_3 = arith.constant 0 : index
    %c0_4 = arith.constant 0 : index
    %2 = vector.load %arg4[%c0_3, %c0_4] : memref<32x32xf32, #tpu.memory_space<vmem>>, vector<32x32xf32>
    %cst = arith.constant dense<0.000000e+00> : vector<48x32xf32>
    %3 = tpu.matmul %0, %1, %cst {dimension_numbers = #tpu.dot_dimension_numbers<[1], [0], [0], [1], [0, 0, 1, 1], [], []>} : vector<48x32xf32>, vector<32x32xf32>, vector<48x32xf32> -> vector<48x32xf32>
    %c0_5 = arith.constant 0 : index
    %c0_6 = arith.constant 0 : index
    %4 = vector.load %arg3[%c0_5, %c0_6] : memref<1x32xf32, #tpu.memory_space<vmem>>, vector<1x32xf32>
    %5 = vector.broadcast %4 : vector<1x32xf32> to vector<48x32xf32>
    %6 = arith.addf %3, %5 : vector<48x32xf32>
    %cst_7 = arith.constant 0.000000e+00 : f32
    %7 = vector.broadcast %cst_7 : f32 to vector<48x32xf32>
    %8 = arith.maximumf %6, %7 : vector<48x32xf32>
    %cst_8 = arith.constant dense<0.000000e+00> : vector<48x32xf32>
    %9 = tpu.matmul %8, %2, %cst_8 {dimension_numbers = #tpu.dot_dimension_numbers<[1], [0], [0], [1], [0, 0, 1, 1], [], []>} : vector<48x32xf32>, vector<32x32xf32>, vector<48x32xf32> -> vector<48x32xf32>
    %c0_9 = arith.constant 0 : index
    %c0_10 = arith.constant 0 : index
    %10 = vector.load %arg5[%c0_9, %c0_10] : memref<1x32xf32, #tpu.memory_space<vmem>>, vector<1x32xf32>
    %11 = vector.broadcast %10 : vector<1x32xf32> to vector<48x32xf32>
    %12 = arith.addf %9, %11 : vector<48x32xf32>
    %cst_11 = arith.constant 0.000000e+00 : f32
    %13 = vector.broadcast %cst_11 : f32 to vector<48x32xf32>
    %14 = arith.maximumf %12, %13 : vector<48x32xf32>
    %c0_12 = arith.constant 0 : index
    %c0_13 = arith.constant 0 : index
    %15 = vector.load %arg6[%c0_12, %c0_13] : memref<1x32xf32, #tpu.memory_space<vmem>>, vector<1x32xf32>
    %16 = vector.broadcast %15 : vector<1x32xf32> to vector<48x32xf32>
    %17 = arith.mulf %14, %16 : vector<48x32xf32>
    %cst_14 = arith.constant dense<0.000000e+00> : vector<48xf32>
    %18 = vector.multi_reduction <add>, %17, %cst_14 [1] : vector<48x32xf32> to vector<48xf32>
    %19 = vector.shape_cast %18 : vector<48xf32> to vector<48x1xf32>
    %c0_15 = arith.constant 0 : index
    %c0_16 = arith.constant 0 : index
    %20 = vector.load %arg7[%c0_15, %c0_16] : memref<1x1xf32, #tpu.memory_space<vmem>>, vector<1x1xf32>
    %21 = vector.broadcast %20 : vector<1x1xf32> to vector<48x1xf32>
    %22 = arith.addf %19, %21 : vector<48x1xf32>
    %c0_17 = arith.constant 0 : index
    %c0_18 = arith.constant 0 : index
    %23 = vector.load %arg8[%c0_17, %c0_18] : memref<48x1xf32, #tpu.memory_space<vmem>>, vector<48x1xf32>
    tpu.vector_store %arg8[%c0_17, %c0_18], %22 {strides = array<i32>} : memref<48x1xf32, #tpu.memory_space<vmem>>, vector<48x1xf32>,
    return
  }
  func.func @transform_0(%arg0: i32) -> (i32, i32) {
    %c0_i32 = arith.constant 0 : i32
    %c0_i32_0 = arith.constant 0 : i32
    return %arg0, %c0_i32 : i32, i32
  }
  func.func @transform_1(%arg0: i32) -> (i32, i32) {
    %c0_i32 = arith.constant 0 : i32
    %c0_i32_0 = arith.constant 0 : i32
    %c0_i32_1 = arith.constant 0 : i32
    return %c0_i32, %c0_i32_0 : i32, i32
  }
  func.func @transform_2(%arg0: i32) -> (i32, i32) {
    %c0_i32 = arith.constant 0 : i32
    %c0_i32_0 = arith.constant 0 : i32
    %c0_i32_1 = arith.constant 0 : i32
    return %c0_i32, %c0_i32_0 : i32, i32
  }
  func.func @transform_3(%arg0: i32) -> (i32, i32) {
    %c0_i32 = arith.constant 0 : i32
    %c0_i32_0 = arith.constant 0 : i32
    %c0_i32_1 = arith.constant 0 : i32
    return %c0_i32, %c0_i32_0 : i32, i32
  }
  func.func @transform_4(%arg0: i32) -> (i32, i32) {
    %c0_i32 = arith.constant 0 : i32
    %c0_i32_0 = arith.constant 0 : i32
    %c0_i32_1 = arith.constant 0 : i32
    return %c0_i32, %c0_i32_0 : i32, i32
  }
  func.func @transform_5(%arg0: i32) -> (i32, i32) {
    %c0_i32 = arith.constant 0 : i32
    %c0_i32_0 = arith.constant 0 : i32
    %c0_i32_1 = arith.constant 0 : i32
    return %c0_i32, %c0_i32_0 : i32, i32
  }
  func.func @transform_6(%arg0: i32) -> (i32, i32) {
    %c0_i32 = arith.constant 0 : i32
    %c0_i32_0 = arith.constant 0 : i32
    %c0_i32_1 = arith.constant 0 : i32
    return %c0_i32, %c0_i32_0 : i32, i32
  }
  func.func @transform_7(%arg0: i32) -> (i32, i32) {
    %c0_i32 = arith.constant 0 : i32
    %c0_i32_0 = arith.constant 0 : i32
    return %arg0, %c0_i32 : i32, i32
  }
}

</mosaic_0001>

<bundles_post_ra>
// kernel: tpu_custom_call.1
= control target key start
LH: loop header
LB: loop body
LE: loop exit
PB: predicated region body
PF: predicated region fallthrough
CT: control target
= control target key end

     0   :  { %vm49_vm0 = vcmask 261120   ;;  %vm339_vm1 = vcmask 7168   ;;  %s572_s1 = inlined_call_operand.vmem [shape: f32[32,32], index: 1, kind: input, shape index: {}]   ;;  %s573_s0 = inlined_call_operand.vmem [shape: f32[48,32], index: 0, kind: input, shape index: {}]   ;;  %s574_s3 = inlined_call_operand.vmem [shape: f32[32,32], index: 3, kind: input, shape index: {}]   ;;  %s575_s2 = inlined_call_operand.vmem [shape: f32[1,32], index: 2, kind: input, shape index: {}]   ;;  %s576_s6 = inlined_call_operand.<no memory space> [shape: f32[1,1], index: 6, kind: input, shape index: {}]   ;;  %s577_s4 = inlined_call_operand.vmem [shape: f32[1,32], index: 4, kind: input, shape index: {}]   ;;  %s578_s5 = inlined_call_operand.vmem [shape: f32[1,32], index: 5, kind: input, shape index: {}]   ;;  %s579_s7 = inlined_call_operand.vmem [shape: f32[48,1], index: 7, kind: output, shape index: {}]  }
   0x1   :  { %v34_v0 = vld [vmem:[%s572_s1] sm:$0xff]  ;;  %v35_v1 = vld [vmem:[%s572_s1 + $0x8] sm:$0xff]  ;;  %v36_v2 = vld [vmem:[%s572_s1 + $0x10] sm:$0xff]  ;;  %v12_v37 = vstv %s576_s6 }
   0x2   :  { %v420_v3 = vpack.c.bf16 %v35_v1, %v34_v0  ;;  %v37_v4 = vld [vmem:[%s572_s1 + $0x18] sm:$0xff]  ;;  %v28_v5 = vld [vmem:[%s573_s0] sm:$0xff]  ;;  %v39_v8 = vld [vmem:[%s574_s3 + $0x8] sm:$0xff]  ;;  %13 = vst [vmem:[#allocation2] sm:$0x1] %v12_v37 }
   0x3   :  { %v424_v6 = vpack.c.bf16 %v37_v4, %v36_v2  ;;  %394 = vmatprep.mubr.msk.f32.mxu0 %vm49_vm0, %v28_v5  ;;  %v38_v7 = vld [vmem:[%s574_s3] sm:$0xff]  ;;  %v29_v10 = vld [vmem:[%s573_s0 + $0x8] sm:$0xff]  ;;  %v30_v11 = vld [vmem:[%s573_s0 + $0x10] sm:$0xff] }
   0x4   :  { %421 = vmatprep.subr.bf16.mxu0 %v420_v3  ;;  %v428_v9 = vpack.c.bf16 %v39_v8, %v38_v7  ;;  %v31_v12 = vld [vmem:[%s573_s0 + $0x18] sm:$0xff]  ;;  %v32_v13 = vld [vmem:[%s573_s0 + $0x20] sm:$0xff]  ;;  %v33_v14 = vld [vmem:[%s573_s0 + $0x28] sm:$0xff] }
   0x5   :  { %423 = vmatpush3.bf16.msra.mxu0 %v420_v3  ;;  %v40_v15 = vld [vmem:[%s574_s3 + $0x10] sm:$0xff]  ;;  %v41_v16 = vld [vmem:[%s574_s3 + $0x18] sm:$0xff]  ;;  %v350_v18 = vld [vmem:[%s575_s2] ss:$0 sm:$0xff] }
   0x6   :  { %425 = vmatprep.subr.bf16.mxu0 %v424_v6  ;;  %429 = vmatprep.subr.bf16.mxu1 %v428_v9  ;;  %v432_v17 = vpack.c.bf16 %v41_v16, %v40_v15  ;;  %v357_v38 = vld [vmem:[%s577_s4] ss:$0 sm:$0xff] }
   0x7   :  { %431 = vmatpush3.bf16.msra.mxu1 %v428_v9  ;;  %v364_v43 = vld [vmem:[%s578_s5] ss:$0 sm:$0xff] }
   0x8   :  { %433 = vmatprep.subr.bf16.mxu1 %v432_v17 }
   0x9   :  { %427 = vmatpush3.bf16.msra.mxu0 %v424_v6  ;;  %v365_v6 = vld [vmem:[#allocation2] ss:$0 sm:$0xff] }
   0xb   :  { %435 = vmatpush3.bf16.msra.mxu1 %v432_v17 }
   0xc   :  { %395 = vmatmul.mubr.msk.f32.vlgmr.msra.gmra.mrb[0].mxu0 %vm49_vm0, %v29_v10 }
   0xd   :  { %397 = vmatprep.mubr.msk.f32.mxu0 %vm49_vm0, %v30_v11 }
  0x10   :  { %398 = vmatmul.mubr.msk.f32.gmra.mrb[2].mxu0 %vm49_vm0, %v31_v12 }
  0x11   :  { %400 = vmatprep.mubr.msk.f32.mxu0 %vm49_vm0, %v32_v13 }
  0x14   :  { %401 = vmatmul.mubr.msk.f32.gmra.mrb[4].mxu0 %vm49_vm0, %v33_v14 }
  0xdf   :  { %v396_v19 = vpop.f32.mrb[0].mxu0 }
  0xe0   :  { %v140_v20 = vadd.f32 %v396_v19, %v350_v18  ;;  %v134_v21 = vpop.f32.mrb[1].mxu0 }
  0xe1   :  { %v135_v22 = vadd.f32 %v350_v18, %v134_v21 }
  0xe2   :  { %v164_v25 = vmax.f32 %v140_v20, 0.0 }
  0xe3   :  { %v163_v23 = vmax.f32 %v135_v22, 0.0  ;;  %v399_v24 = vpop.f32.mrb[2].mxu0 }
  0xe4   :  { %v150_v26 = vadd.f32 %v399_v24, %v350_v18  ;;  %v144_v27 = vpop.f32.mrb[3].mxu0 }
  0xe5   :  { %v145_v28 = vadd.f32 %v350_v18, %v144_v27  ;;  %411 = vmatprep.mubr.msk.f32.mxu1 %vm49_vm0, %v163_v23 }
  0xe6   :  { %412 = vmatmul.mubr.msk.f32.vlgmr.msra.gmra.mrb[0].mxu1 %vm49_vm0, %v164_v25  ;;  %v166_v31 = vmax.f32 %v150_v26, 0.0 }
  0xe7   :  { %v165_v29 = vmax.f32 %v145_v28, 0.0  ;;  %v402_v30 = vpop.f32.mrb[4].mxu0 }
  0xe8   :  { %v160_v32 = vadd.f32 %v402_v30, %v350_v18  ;;  %v154_v33 = vpop.f32.mrb[5].mxu0 }
  0xe9   :  { %v155_v34 = vadd.f32 %v350_v18, %v154_v33  ;;  %414 = vmatprep.mubr.msk.f32.mxu1 %vm49_vm0, %v165_v29 }
  0xea   :  { %v168_v35 = vmax.f32 %v160_v32, 0.0  ;;  %415 = vmatmul.mubr.msk.f32.gmra.mrb[2].mxu1 %vm49_vm0, %v166_v31 }
  0xeb   :  { %v167_v36 = vmax.f32 %v155_v34, 0.0 }
  0xed   :  { %417 = vmatprep.mubr.msk.f32.mxu1 %vm49_vm0, %v167_v36 }
  0xee   :  { %418 = vmatmul.mubr.msk.f32.gmra.mrb[4].mxu1 %vm49_vm0, %v168_v35 }
 0x1b9   :  { %v413_v39 = vpop.f32.mrb[0].mxu1 }
 0x1ba   :  { %v266_v40 = vadd.f32 %v413_v39, %v357_v38  ;;  %v260_v41 = vpop.f32.mrb[1].mxu1 }
 0x1bb   :  { %v261_v42 = vadd.f32 %v357_v38, %v260_v41 }
 0x1bc   :  { %v290_v44 = vmax.f32 %v266_v40, 0.0 }
 0x1bd   :  { %v289_v45 = vmax.f32 %v261_v42, 0.0  ;;  %v416_v46 = vpop.f32.mrb[2].mxu1 }
 0x1be   :  { %v276_v47 = vadd.f32 %v416_v46, %v357_v38  ;;  %v270_v48 = vpop.f32.mrb[3].mxu1  ;;  %v303_v49 = vmul.f32 %v364_v43, %v290_v44 }
 0x1bf   :  { %v271_v50 = vadd.f32 %v357_v38, %v270_v48  ;;  %v302_v53 = vmul.f32 %v364_v43, %v289_v45 }
 0x1c0   :  { %v292_v51 = vmax.f32 %v276_v47, 0.0  ;;  %v311_v52 = vsel %vm49_vm0, %v303_v49, 0.0 }
 0x1c1   :  { %v291_v54 = vmax.f32 %v271_v50, 0.0  ;;  %312 = vadd.xlane.f32.xlu0 %v311_v52  ;;  %v419_v55 = vpop.f32.mrb[4].mxu1  ;;  %v308_v62 = vsel %vm49_vm0, %v302_v53, 0.0 }
 0x1c2   :  { %v286_v56 = vadd.f32 %v419_v55, %v357_v38  ;;  %v280_v57 = vpop.f32.mrb[5].mxu1  ;;  %v305_v58 = vmul.f32 %v364_v43, %v292_v51 }
 0x1c3   :  { %v281_v59 = vadd.f32 %v357_v38, %v280_v57  ;;  %v304_v63 = vmul.f32 %v364_v43, %v291_v54 }
 0x1c4   :  { %v294_v60 = vmax.f32 %v286_v56, 0.0  ;;  %v317_v61 = vsel %vm49_vm0, %v305_v58, 0.0 }
 0x1c5   :  { %v293_v0 = vmax.f32 %v281_v59, 0.0  ;;  %318 = vadd.xlane.f32.xlu1 %v317_v61  ;;  %309 = vadd.xlane.f32.xlu0 %v308_v62  ;;  %v314_v2 = vsel %vm49_vm0, %v304_v63, 0.0 }
 0x1c6   :  { %v307_v3 = vmul.f32 %v364_v43, %v294_v60 }
 0x1c7   :  { %v306_v1 = vmul.f32 %v364_v43, %v293_v0 }
 0x1c8   :  { %v323_v5 = vsel %vm49_vm0, %v307_v3, 0.0 }
 0x1c9   :  { %315 = vadd.xlane.f32.xlu1 %v314_v2  ;;  %v320_v4 = vsel %vm49_vm0, %v306_v1, 0.0 }
 0x1ca   :  { %321 = vadd.xlane.f32.xlu0 %v320_v4 }
 0x1cd   :  { %324 = vadd.xlane.f32.xlu1 %v323_v5 }
 0x24e   :  { %v313_v7 = vpop.xlane.xlu0 %312 }
 0x24f   :  { %v334_v8 = vadd.f32 %v365_v6, %v313_v7 }
 0x251   :  { %341 = vst.msk [vmem:[%s579_s7 + $0x8] sm:$0xff] %vm339_vm1, %v334_v8 }
 0x252   :  { %v319_v9 = vpop.xlane.xlu1 %318  ;;  %v310_v10 = vpop.xlane.xlu0 %309 }
 0x253   :  { %v336_v11 = vadd.f32 %v365_v6, %v319_v9  ;;  %v333_v12 = vadd.f32 %v365_v6, %v310_v10 }
 0x255   :  { %343 = vst.msk [vmem:[%s579_s7 + $0x18] sm:$0xff] %vm339_vm1, %v336_v11  ;;  %340 = vst.msk [vmem:[%s579_s7] sm:$0xff] %vm339_vm1, %v333_v12 }
 0x256   :  { %v316_v13 = vpop.xlane.xlu1 %315 }
 0x257   :  { %v335_v14 = vadd.f32 %v365_v6, %v316_v13  ;;  %v322_v15 = vpop.xlane.xlu0 %321 }
 0x258   :  { %v337_v16 = vadd.f32 %v365_v6, %v322_v15 }
 0x259   :  { %342 = vst.msk [vmem:[%s579_s7 + $0x10] sm:$0xff] %vm339_vm1, %v335_v14 }
 0x25a   :  { %344 = vst.msk [vmem:[%s579_s7 + $0x20] sm:$0xff] %vm339_vm1, %v337_v16  ;;  %v325_v17 = vpop.xlane.xlu1 %324 }
 0x25b   :  { %v338_v18 = vadd.f32 %v365_v6, %v325_v17 }
 0x25d   :  { %345 = vst.msk [vmem:[%s579_s7 + $0x28] sm:$0xff] %vm339_vm1, %v338_v18 }

</bundles_post_ra>
